<compile_context>
chip_gen: v7x
topology: tpu7x:2x2x1
jax: 0.10.0
libtpu: 0.0.40
codegen_flags: <defaults>
</compile_context>

<pallas_src>
from functools import partial

import jax
import jax.numpy as jnp
from jax.experimental import pallas as pl
from jax.experimental.pallas import tpu as pltpu


def _round_up(x, m):
    return ((x + m - 1) // m) * m


# ---------------------------------------------------------------------------
# kernels
# ---------------------------------------------------------------------------

def _stats_kernel(x_ref, sum_ref, gram_ref):
    # x_ref   : (Nb, Cin, TM)  native dtype
    # sum_ref : (1, Cin, 1)    f32 partial for this batch block (resident over m)
    # gram_ref: (1, Cin, Cin)  f32 partial for this batch block
    @pl.when(pl.program_id(1) == 0)
    def _():
        sum_ref[...] = jnp.zeros_like(sum_ref)
        gram_ref[...] = jnp.zeros_like(gram_ref)

    for n in range(x_ref.shape[0]):          # static unroll over the folded batch
        xt = x_ref[n]                        # (Cin, TM), native dtype on the MXU
        sum_ref[0] += jnp.sum(xt.astype(jnp.float32), axis=1, keepdims=True)
        gram_ref[0] += jax.lax.dot_general(
            xt, xt, dimension_numbers=(((1,), (1,)), ((), ())),
            preferred_element_type=jnp.float32)


def _conv_affine_kernel(x_ref, w_ref, shift_ref, o_ref):
    # x_ref: (Nb, Cin, TM)  w_ref: (Cout, Cin)  shift_ref: (Cout, 1) f32
    # o_ref: (Nb, Cout, TM)
    w = w_ref[...]
    shift = shift_ref[...]
    for n in range(x_ref.shape[0]):          # static unroll over the folded batch
        y = jnp.dot(w, x_ref[n], preferred_element_type=jnp.float32)
        o_ref[n] = (y + shift).astype(o_ref.dtype)


# ---------------------------------------------------------------------------
# tiling / VMEM budget helpers
# ---------------------------------------------------------------------------

def _tpu_vmem_config():
    """(vmem_limit_bytes, tile_byte_budget) per TPU generation."""
    kind = ""
    try:
        kind = jax.devices()[0].device_kind.lower()
    except Exception:
        pass
    if "v7" in kind or "tpu7" in kind:
        # 64 MiB physical per TC: keep double-buffered tiles inside the 32 MiB scope
        return 32 * 1024 * 1024, 22 * 1024 * 1024
    if "v5 lite" in kind or "v5e" in kind or "v6" in kind:
        # 128 MiB physical: raise the scoped limit and let the tiles grow
        return 64 * 1024 * 1024, 48 * 1024 * 1024
    # unknown / older chip: stay well inside the default scoped limit
    return None, 8 * 1024 * 1024


def _pick_tm(msp, tm_cap):
    """Largest lane tile (multiple of 128) within the VMEM cap, preferring a tile
    count that needs no (or minimal) lane padding.  Returns (TM, Msp_padded)."""
    msp128 = _round_up(msp, 128)
    tm_cap = max(128, (tm_cap // 128) * 128)
    if msp128 <= tm_cap:
        return msp128, msp128                       # single lane tile
    n0 = -(-msp128 // tm_cap)                       # minimum number of lane tiles
    best_tm, best_pad = None, None
    for n in range(n0, n0 + 16):                    # search near the biggest tile
        tm = _round_up(-(-msp // n), 128)
        if tm > tm_cap or tm < 128:
            continue
        pad = tm * n - msp
        if best_pad is None or pad < best_pad:
            best_tm, best_pad = tm, pad
        if pad < 128:                               # essentially no padding
            break
    if best_tm is None:                             # defensive fallback
        best_tm = tm_cap
    n_tiles = -(-msp // best_tm)
    return best_tm, best_tm * n_tiles


# ---------------------------------------------------------------------------
# forward
# ---------------------------------------------------------------------------

@partial(jax.jit, static_argnames=("stride", "use_bn", "eps"))
def single_conv_block(x_nchw, conv_w, conv_b, bn_gamma, bn_beta,
                      *, stride: int, use_bn: bool = True, eps: float = 1e-5):
    """Forward of SingleConvBlock.

    x_nchw : (N, Cin, H, W)
    conv_w : (Cout, Cin, 1, 1)   (PyTorch Conv2d weight layout)
    conv_b : (Cout,)
    bn_gamma, bn_beta : (Cout,)
    """
    N, Cin, H, W = x_nchw.shape
    Cout = conv_w.shape[0]

    # ---- stride of a 1x1 conv is pure spatial subsampling ----
    if stride == 1:
        Ho, Wo = H, W
        x_flat = x_nchw.reshape(N, Cin, H * W)       # free reshape, zero-copy
    else:
        # TODO(synk): fuse the subsample into the kernel DMA (see header).
        xs = x_nchw[:, :, ::stride, ::stride]
        Ho, Wo = xs.shape[2], xs.shape[3]
        x_flat = xs.reshape(N, Cin, Ho * Wo)
    Msp = Ho * Wo

    # ---- generation-aware tile sizing from a VMEM byte budget ----
    vmem_limit, tile_budget = _tpu_vmem_config()
    itemsize = jnp.dtype(x_nchw.dtype).itemsize
    per_lane = 2 * (Cin + Cout) * itemsize           # double-buffered x + out per lane
    reserve = 4 * 4 * (Cin * Cin + Cout * Cin + 2 * Cin + 2 * Cout)  # weights/stats
    avail = max(tile_budget - reserve, 512 * 1024)
    tm_cap = max(128, (avail // per_lane) // 128 * 128)
    TM, Msp_pad = _pick_tm(Msp, tm_cap)

    Nb = 1                                           # fold batch into the tile
    for cand in range(N, 0, -1):
        if N % cand == 0 and cand * per_lane * TM <= avail:
            Nb = cand
            break

    if Msp_pad != Msp:                               # zero-pad only when unavoidable
        x_flat = jnp.pad(x_flat, ((0, 0), (0, 0), (0, Msp_pad - Msp)))

    n_blocks = N // Nb
    m_tiles = Msp_pad // TM
    grid = (n_blocks, m_tiles)
    x_spec = pl.BlockSpec((Nb, Cin, TM), lambda n, m: (n, 0, m))

    w_mat = conv_w.reshape(Cout, Cin).astype(jnp.float32)

    if use_bn:
        # ---- pass 1: per-batch-block input statistics (N "parallel" for megacore) ----
        sums_p, gram_p = pl.pallas_call(
            _stats_kernel,
            grid=grid,
            in_specs=[x_spec],
            out_specs=[pl.BlockSpec((1, Cin, 1), lambda n, m: (n, 0, 0)),
                       pl.BlockSpec((1, Cin, Cin), lambda n, m: (n, 0, 0))],
            out_shape=[jax.ShapeDtypeStruct((n_blocks, Cin, 1), jnp.float32),
                       jax.ShapeDtypeStruct((n_blocks, Cin, Cin), jnp.float32)],
            compiler_params=pltpu.CompilerParams(
                dimension_semantics=("parallel", "arbitrary"),
                vmem_limit_bytes=vmem_limit),
        )(x_flat)

        # ---- tiny (Cin/Cout-sized) BN algebra in plain XLA, f32 throughout ----
        m_total = jnp.float32(N * Msp)               # true pixel count (padding is zeros)
        mu_x = sums_p.sum(axis=0)[:, 0] / m_total    # (Cin,)
        ex2 = gram_p.sum(axis=0) / m_total           # (Cin, Cin)   E[x x^T]
        m_y = w_mat @ mu_x                           # (Cout,)      batch mean of W x
        var = jnp.einsum("oc,cd,od->o", w_mat, ex2, w_mat) - m_y * m_y
        var = jnp.maximum(var, 0.0)
        inv = jax.lax.rsqrt(var + jnp.float32(eps))
        scale = bn_gamma.astype(jnp.float32) * inv
        # conv bias cancels exactly under batch norm -> folded away
        shift = bn_beta.astype(jnp.float32) - scale * m_y
        w_eff = w_mat * scale[:, None]               # fold BN scale into the weight
    else:
        w_eff = w_mat
        shift = conv_b.astype(jnp.float32)

    # feed the MXU in the activation dtype (native bf16 path when x is bf16);
    # accumulation stays f32 via preferred_element_type inside the kernel.
    w_eff = w_eff.astype(x_nchw.dtype)
    shift_col = shift.reshape(Cout, 1)

    # ---- pass 2: lane-dense, embarrassingly parallel matmul + per-channel affine ----
    out_flat = pl.pallas_call(
        _conv_affine_kernel,
        grid=grid,
        in_specs=[x_spec,
                  pl.BlockSpec((Cout, Cin), lambda n, m: (0, 0)),
                  pl.BlockSpec((Cout, 1), lambda n, m: (0, 0))],
        out_specs=pl.BlockSpec((Nb, Cout, TM), lambda n, m: (n, 0, m)),
        out_shape=jax.ShapeDtypeStruct((N, Cout, Msp_pad), x_nchw.dtype),
        compiler_params=pltpu.CompilerParams(
            dimension_semantics=("parallel", "parallel"),
            vmem_limit_bytes=vmem_limit),
    )(x_flat, w_eff, shift_col)

    if Msp_pad != Msp:                               # un-pad only when padding existed
        out_flat = out_flat[:, :, :Msp]
    return out_flat.reshape(N, Cout, Ho, Wo)


if __name__ == "__main__":
    in_features, out_features, stride = 4, 8, 2
    N, H, W = 2, 16, 16

    key = jax.random.PRNGKey(0)
    kx, kw, kb, kg, kbe = jax.random.split(key, 5)

    x = jax.random.normal(kx, (N, in_features, H, W), dtype=jnp.float32)

    fan_in = in_features * 1 * 1
    bound = 1.0 / (fan_in ** 0.5)
    conv_w = jax.random.uniform(kw, (out_features, in_features, 1, 1),
                                minval=-bound, maxval=bound, dtype=jnp.float32)
    conv_b = jax.random.uniform(kb, (out_features,),
                                minval=-bound, maxval=bound, dtype=jnp.float32)
    bn_gamma = jnp.ones((out_features,), jnp.float32) \
        + 0.1 * jax.random.normal(kg, (out_features,), dtype=jnp.float32)
    bn_beta = 0.1 * jax.random.normal(kbe, (out_features,), dtype=jnp.float32)

    out = single_conv_block(x, conv_w, conv_b, bn_gamma, bn_beta,
                            stride=stride, use_bn=True)
    jax.block_until_ready(out)

    # Pure-JAX reference (training-mode BN, biased batch variance).
    xs = x[:, :, ::stride, ::stride]
    ref_conv = jnp.einsum("nchw,oc->nohw", xs,
                          conv_w.reshape(out_features, in_features)) \
        + conv_b[None, :, None, None]
    mean = ref_conv.mean(axis=(0, 2, 3), keepdims=True)
    var = ((ref_conv - mean) ** 2).mean(axis=(0, 2, 3), keepdims=True)
    ref = (ref_conv - mean) * jax.lax.rsqrt(var + 1e-5) \
        * bn_gamma[None, :, None, None] + bn_beta[None, :, None, None]

    assert out.shape == (N, out_features, H // stride, W // stride)
    assert jnp.allclose(out, ref, atol=1e-4, rtol=1e-4)

    # exercise the use_bn=False path as well (conv + bias only)
    out_nobn = single_conv_block(x, conv_w, conv_b, bn_gamma, bn_beta,
                                 stride=stride, use_bn=False)
    jax.block_until_ready(out_nobn)
    assert jnp.allclose(out_nobn, ref_conv, atol=1e-5, rtol=1e-5)

    # exercise the zero-copy stride==1 path too
    out_s1 = single_conv_block(x, conv_w, conv_b, bn_gamma, bn_beta,
                               stride=1, use_bn=False)
    jax.block_until_ready(out_s1)
    ref_s1 = jnp.einsum("nchw,oc->nohw", x,
                        conv_w.reshape(out_features, in_features)) \
        + conv_b[None, :, None, None]
    assert jnp.allclose(out_s1, ref_s1, atol=1e-5, rtol=1e-5)

    print("KERNEL_OK")
</pallas_src>

<mosaic_0001>
module attributes {stable_mosaic.version = 11 : i64} {
  func.func @_conv_affine_kernel(%arg0: i32, %arg1: i32, %arg2: memref<2x4x128xf32, #tpu.memory_space<vmem>>, %arg3: memref<8x4xf32, #tpu.memory_space<vmem>>, %arg4: memref<8x1xf32, #tpu.memory_space<vmem>>, %arg5: memref<2x8x128xf32, #tpu.memory_space<vmem>>) attributes {dimension_semantics = [#tpu.dimension_semantics<parallel>, #tpu.dimension_semantics<parallel>], iteration_bounds = array<i64: 1, 1>, scalar_prefetch = 0 : i64, scratch_operands = 0 : i64, tpu.core_type = #tpu.core_type<tc>, window_params = [{transform_indices = @transform_0, window_bounds = array<i64: 2, 4, 128>}, {pipeline_mode = #tpu.pipeline_mode<synchronous>, transform_indices = @transform_1, window_bounds = array<i64: 8, 4>}, {pipeline_mode = #tpu.pipeline_mode<synchronous>, transform_indices = @transform_2, window_bounds = array<i64: 8, 1>}, {transform_indices = @transform_3, window_bounds = array<i64: 2, 8, 128>}]} {
    %c0 = arith.constant 0 : index
    %c0_0 = arith.constant 0 : index
    %0 = vector.load %arg3[%c0, %c0_0] : memref<8x4xf32, #tpu.memory_space<vmem>>, vector<8x4xf32>
    %c0_1 = arith.constant 0 : index
    %c0_2 = arith.constant 0 : index
    %1 = vector.load %arg4[%c0_1, %c0_2] : memref<8x1xf32, #tpu.memory_space<vmem>>, vector<8x1xf32>
    %c0_3 = arith.constant 0 : index
    %c0_4 = arith.constant 0 : index
    %c0_5 = arith.constant 0 : index
    %2 = vector.load %arg2[%c0_3, %c0_4, %c0_5] : memref<2x4x128xf32, #tpu.memory_space<vmem>>, vector<1x4x128xf32>
    %3 = vector.shape_cast %2 : vector<1x4x128xf32> to vector<4x128xf32>
    %cst = arith.constant dense<0.000000e+00> : vector<8x128xf32>
    %4 = tpu.matmul %0, %3, %cst {dimension_numbers = #tpu.dot_dimension_numbers<[1], [0], [0], [1], [0, 0, 1, 1], [], []>} : vector<8x4xf32>, vector<4x128xf32>, vector<8x128xf32> -> vector<8x128xf32>
    %5 = vector.broadcast %1 : vector<8x1xf32> to vector<8x128xf32>
    %6 = arith.addf %4, %5 : vector<8x128xf32>
    %c0_6 = arith.constant 0 : index
    %c0_7 = arith.constant 0 : index
    %c0_8 = arith.constant 0 : index
    %7 = vector.load %arg5[%c0_6, %c0_7, %c0_8] : memref<2x8x128xf32, #tpu.memory_space<vmem>>, vector<1x8x128xf32>
    %8 = vector.shape_cast %7 : vector<1x8x128xf32> to vector<8x128xf32>
    %9 = vector.shape_cast %6 : vector<8x128xf32> to vector<1x8x128xf32>
    tpu.vector_store %arg5[%c0_6, %c0_7, %c0_8], %9 {strides = array<i32>} : memref<2x8x128xf32, #tpu.memory_space<vmem>>, vector<1x8x128xf32>,
    %c1 = arith.constant 1 : index
    %c0_9 = arith.constant 0 : index
    %c0_10 = arith.constant 0 : index
    %10 = vector.load %arg2[%c1, %c0_9, %c0_10] : memref<2x4x128xf32, #tpu.memory_space<vmem>>, vector<1x4x128xf32>
    %11 = vector.shape_cast %10 : vector<1x4x128xf32> to vector<4x128xf32>
    %cst_11 = arith.constant dense<0.000000e+00> : vector<8x128xf32>
    %12 = tpu.matmul %0, %11, %cst_11 {dimension_numbers = #tpu.dot_dimension_numbers<[1], [0], [0], [1], [0, 0, 1, 1], [], []>} : vector<8x4xf32>, vector<4x128xf32>, vector<8x128xf32> -> vector<8x128xf32>
    %13 = vector.broadcast %1 : vector<8x1xf32> to vector<8x128xf32>
    %14 = arith.addf %12, %13 : vector<8x128xf32>
    %c1_12 = arith.constant 1 : index
    %c0_13 = arith.constant 0 : index
    %c0_14 = arith.constant 0 : index
    %15 = vector.load %arg5[%c1_12, %c0_13, %c0_14] : memref<2x8x128xf32, #tpu.memory_space<vmem>>, vector<1x8x128xf32>
    %16 = vector.shape_cast %15 : vector<1x8x128xf32> to vector<8x128xf32>
    %17 = vector.shape_cast %14 : vector<8x128xf32> to vector<1x8x128xf32>
    tpu.vector_store %arg5[%c1_12, %c0_13, %c0_14], %17 {strides = array<i32>} : memref<2x8x128xf32, #tpu.memory_space<vmem>>, vector<1x8x128xf32>,
    return
  }
  func.func @transform_0(%arg0: i32, %arg1: i32) -> (i32, i32, i32) {
    %c0_i32 = arith.constant 0 : i32
    %c0_i32_0 = arith.constant 0 : i32
    return %arg0, %c0_i32, %arg1 : i32, i32, i32
  }
  func.func @transform_1(%arg0: i32, %arg1: i32) -> (i32, i32) {
    %c0_i32 = arith.constant 0 : i32
    %c0_i32_0 = arith.constant 0 : i32
    %c0_i32_1 = arith.constant 0 : i32
    return %c0_i32, %c0_i32_0 : i32, i32
  }
  func.func @transform_2(%arg0: i32, %arg1: i32) -> (i32, i32) {
    %c0_i32 = arith.constant 0 : i32
    %c0_i32_0 = arith.constant 0 : i32
    %c0_i32_1 = arith.constant 0 : i32
    return %c0_i32, %c0_i32_0 : i32, i32
  }
  func.func @transform_3(%arg0: i32, %arg1: i32) -> (i32, i32, i32) {
    %c0_i32 = arith.constant 0 : i32
    %c0_i32_0 = arith.constant 0 : i32
    return %arg0, %c0_i32, %arg1 : i32, i32, i32
  }
}

module attributes {stable_mosaic.version = 11 : i64} {
  func.func @_stats_kernel(%arg0: i32, %arg1: i32, %arg2: memref<2x4x128xf32, #tpu.memory_space<vmem>>, %arg3: memref<1x4x1xf32, #tpu.memory_space<vmem>>, %arg4: memref<1x4x4xf32, #tpu.memory_space<vmem>>) attributes {dimension_semantics = [#tpu.dimension_semantics<parallel>, #tpu.dimension_semantics<arbitrary>], iteration_bounds = array<i64: 1, 1>, scalar_prefetch = 0 : i64, scratch_operands = 0 : i64, tpu.core_type = #tpu.core_type<tc>, window_params = [{transform_indices = @transform_0, window_bounds = array<i64: 2, 4, 128>}, {transform_indices = @transform_1, window_bounds = array<i64: 1, 4, 1>}, {transform_indices = @transform_2, window_bounds = array<i64: 1, 4, 4>}]} {
    %c0_i32 = arith.constant 0 : i32
    %0 = arith.cmpi eq, %arg1, %c0_i32 : i32
    %1 = arith.extui %0 : i1 to i32
    %c0_i32_0 = arith.constant 0 : i32
    %2 = arith.cmpi ne, %1, %c0_i32_0 : i32
    scf.if %2 {
      %cst_32 = arith.constant 0.000000e+00 : f32
      %37 = vector.broadcast %cst_32 : f32 to vector<1x4x1xf32>
      %c0_33 = arith.constant 0 : index
      %c0_34 = arith.constant 0 : index
      %c0_35 = arith.constant 0 : index
      %38 = vector.load %arg3[%c0_33, %c0_34, %c0_35] : memref<1x4x1xf32, #tpu.memory_space<vmem>>, vector<1x4x1xf32>
      tpu.vector_store %arg3[%c0_33, %c0_34, %c0_35], %37 {strides = array<i32>} : memref<1x4x1xf32, #tpu.memory_space<vmem>>, vector<1x4x1xf32>,
      %cst_36 = arith.constant 0.000000e+00 : f32
      %39 = vector.broadcast %cst_36 : f32 to vector<1x4x4xf32>
      %c0_37 = arith.constant 0 : index
      %c0_38 = arith.constant 0 : index
      %c0_39 = arith.constant 0 : index
      %40 = vector.load %arg4[%c0_37, %c0_38, %c0_39] : memref<1x4x4xf32, #tpu.memory_space<vmem>>, vector<1x4x4xf32>
      tpu.vector_store %arg4[%c0_37, %c0_38, %c0_39], %39 {strides = array<i32>} : memref<1x4x4xf32, #tpu.memory_space<vmem>>, vector<1x4x4xf32>,
    } else {
    }
    %c0 = arith.constant 0 : index
    %c0_1 = arith.constant 0 : index
    %c0_2 = arith.constant 0 : index
    %3 = vector.load %arg2[%c0, %c0_1, %c0_2] : memref<2x4x128xf32, #tpu.memory_space<vmem>>, vector<1x4x128xf32>
    %4 = vector.shape_cast %3 : vector<1x4x128xf32> to vector<4x128xf32>
    %c0_3 = arith.constant 0 : index
    %c0_4 = arith.constant 0 : index
    %c0_5 = arith.constant 0 : index
    %5 = vector.load %arg3[%c0_3, %c0_4, %c0_5] : memref<1x4x1xf32, #tpu.memory_space<vmem>>, vector<1x4x1xf32>
    %6 = vector.shape_cast %5 : vector<1x4x1xf32> to vector<4x1xf32>
    %cst = arith.constant dense<0.000000e+00> : vector<4xf32>
    %7 = vector.multi_reduction <add>, %4, %cst [1] : vector<4x128xf32> to vector<4xf32>
    %8 = vector.shape_cast %7 : vector<4xf32> to vector<4x1xf32>
    %9 = arith.addf %6, %8 : vector<4x1xf32>
    %c0_6 = arith.constant 0 : index
    %c0_7 = arith.constant 0 : index
    %c0_8 = arith.constant 0 : index
    %10 = vector.load %arg3[%c0_6, %c0_7, %c0_8] : memref<1x4x1xf32, #tpu.memory_space<vmem>>, vector<1x4x1xf32>
    %11 = vector.shape_cast %10 : vector<1x4x1xf32> to vector<4x1xf32>
    %12 = vector.shape_cast %9 : vector<4x1xf32> to vector<1x4x1xf32>
    tpu.vector_store %arg3[%c0_6, %c0_7, %c0_8], %12 {strides = array<i32>} : memref<1x4x1xf32, #tpu.memory_space<vmem>>, vector<1x4x1xf32>,
    %c0_9 = arith.constant 0 : index
    %c0_10 = arith.constant 0 : index
    %c0_11 = arith.constant 0 : index
    %13 = vector.load %arg4[%c0_9, %c0_10, %c0_11] : memref<1x4x4xf32, #tpu.memory_space<vmem>>, vector<1x4x4xf32>
    %14 = vector.shape_cast %13 : vector<1x4x4xf32> to vector<4x4xf32>
    %cst_12 = arith.constant dense<0.000000e+00> : vector<4x4xf32>
    %15 = tpu.matmul %4, %4, %cst_12 {dimension_numbers = #tpu.dot_dimension_numbers<[1], [1], [0], [0], [0, 0, 1, 0], [], []>} : vector<4x128xf32>, vector<4x128xf32>, vector<4x4xf32> -> vector<4x4xf32>
    %16 = arith.addf %14, %15 : vector<4x4xf32>
    %c0_13 = arith.constant 0 : index
    %c0_14 = arith.constant 0 : index
    %c0_15 = arith.constant 0 : index
    %17 = vector.load %arg4[%c0_13, %c0_14, %c0_15] : memref<1x4x4xf32, #tpu.memory_space<vmem>>, vector<1x4x4xf32>
    %18 = vector.shape_cast %17 : vector<1x4x4xf32> to vector<4x4xf32>
    %19 = vector.shape_cast %16 : vector<4x4xf32> to vector<1x4x4xf32>
    tpu.vector_store %arg4[%c0_13, %c0_14, %c0_15], %19 {strides = array<i32>} : memref<1x4x4xf32, #tpu.memory_space<vmem>>, vector<1x4x4xf32>,
    %c1 = arith.constant 1 : index
    %c0_16 = arith.constant 0 : index
    %c0_17 = arith.constant 0 : index
    %20 = vector.load %arg2[%c1, %c0_16, %c0_17] : memref<2x4x128xf32, #tpu.memory_space<vmem>>, vector<1x4x128xf32>
    %21 = vector.shape_cast %20 : vector<1x4x128xf32> to vector<4x128xf32>
    %c0_18 = arith.constant 0 : index
    %c0_19 = arith.constant 0 : index
    %c0_20 = arith.constant 0 : index
    %22 = vector.load %arg3[%c0_18, %c0_19, %c0_20] : memref<1x4x1xf32, #tpu.memory_space<vmem>>, vector<1x4x1xf32>
    %23 = vector.shape_cast %22 : vector<1x4x1xf32> to vector<4x1xf32>
    %cst_21 = arith.constant dense<0.000000e+00> : vector<4xf32>
    %24 = vector.multi_reduction <add>, %21, %cst_21 [1] : vector<4x128xf32> to vector<4xf32>
    %25 = vector.shape_cast %24 : vector<4xf32> to vector<4x1xf32>
    %26 = arith.addf %23, %25 : vector<4x1xf32>
    %c0_22 = arith.constant 0 : index
    %c0_23 = arith.constant 0 : index
    %c0_24 = arith.constant 0 : index
    %27 = vector.load %arg3[%c0_22, %c0_23, %c0_24] : memref<1x4x1xf32, #tpu.memory_space<vmem>>, vector<1x4x1xf32>
    %28 = vector.shape_cast %27 : vector<1x4x1xf32> to vector<4x1xf32>
    %29 = vector.shape_cast %26 : vector<4x1xf32> to vector<1x4x1xf32>
    tpu.vector_store %arg3[%c0_22, %c0_23, %c0_24], %29 {strides = array<i32>} : memref<1x4x1xf32, #tpu.memory_space<vmem>>, vector<1x4x1xf32>,
    %c0_25 = arith.constant 0 : index
    %c0_26 = arith.constant 0 : index
    %c0_27 = arith.constant 0 : index
    %30 = vector.load %arg4[%c0_25, %c0_26, %c0_27] : memref<1x4x4xf32, #tpu.memory_space<vmem>>, vector<1x4x4xf32>
    %31 = vector.shape_cast %30 : vector<1x4x4xf32> to vector<4x4xf32>
    %cst_28 = arith.constant dense<0.000000e+00> : vector<4x4xf32>
    %32 = tpu.matmul %21, %21, %cst_28 {dimension_numbers = #tpu.dot_dimension_numbers<[1], [1], [0], [0], [0, 0, 1, 0], [], []>} : vector<4x128xf32>, vector<4x128xf32>, vector<4x4xf32> -> vector<4x4xf32>
    %33 = arith.addf %31, %32 : vector<4x4xf32>
    %c0_29 = arith.constant 0 : index
    %c0_30 = arith.constant 0 : index
    %c0_31 = arith.constant 0 : index
    %34 = vector.load %arg4[%c0_29, %c0_30, %c0_31] : memref<1x4x4xf32, #tpu.memory_space<vmem>>, vector<1x4x4xf32>
    %35 = vector.shape_cast %34 : vector<1x4x4xf32> to vector<4x4xf32>
    %36 = vector.shape_cast %33 : vector<4x4xf32> to vector<1x4x4xf32>
    tpu.vector_store %arg4[%c0_29, %c0_30, %c0_31], %36 {strides = array<i32>} : memref<1x4x4xf32, #tpu.memory_space<vmem>>, vector<1x4x4xf32>,
    return
  }
  func.func @transform_0(%arg0: i32, %arg1: i32) -> (i32, i32, i32) {
    %c0_i32 = arith.constant 0 : i32
    %c0_i32_0 = arith.constant 0 : i32
    return %arg0, %c0_i32, %arg1 : i32, i32, i32
  }
  func.func @transform_1(%arg0: i32, %arg1: i32) -> (i32, i32, i32) {
    %c0_i32 = arith.constant 0 : i32
    %c0_i32_0 = arith.constant 0 : i32
    %c0_i32_1 = arith.constant 0 : i32
    return %arg0, %c0_i32, %c0_i32_0 : i32, i32, i32
  }
  func.func @transform_2(%arg0: i32, %arg1: i32) -> (i32, i32, i32) {
    %c0_i32 = arith.constant 0 : i32
    %c0_i32_0 = arith.constant 0 : i32
    %c0_i32_1 = arith.constant 0 : i32
    return %arg0, %c0_i32, %c0_i32_0 : i32, i32, i32
  }
}

</mosaic_0001>

<bundles_post_ra>
// kernel: single_conv_block.3
= control target key start
LH: loop header
LB: loop body
LE: loop exit
PB: predicated region body
PF: predicated region fallthrough
CT: control target
= control target key end

     0   :  { %vm26_vm0 = vcmask 1043456   ;;  %v206_v0 = vmov 0.0   ;;  %vm22_vm1 = vcmask 31744   ;;  %vm207_vm2 = vmmov 0   ;;  %s247_s0 = inlined_call_operand.vmem [shape: f32[2,4,128], index: 0, kind: input, shape index: {}]   ;;  %s248_s1 = inlined_call_operand.vmem [shape: f32[8,4], index: 1, kind: input, shape index: {}]   ;;  %s249_s2 = inlined_call_operand.vmem [shape: f32[8,1], index: 2, kind: input, shape index: {}]   ;;  %s250_s3 = inlined_call_operand.vmem [shape: f32[2,8,128], index: 3, kind: output, shape index: {}]  }
   0x1   :  { %192 = vmatprep.subr.mxu0 %v206_v0  ;;  %197 = vmatprep.subr.mxu1 %v206_v0  ;;  %v16_v1 = vld [vmem:[%s247_s0] sm:$0xf]  ;;  %v184_v2 = vld [vmem:[%s247_s0 + $0x4] sm:$0xf]  ;;  %v208_v5 = vmov 0  }
   0x2   :  { %v14_v3 = vld [vmem:[%s248_s1] sm:$0xff]  ;;  %193 = vmatpush3.msk.msra.mxu0 %vm26_vm0, %v16_v1  ;;  %194 = vmatprep.mubr.msk.f32.mxu0 %vm207_vm2, %v206_v0 }
   0x3   :  { %198 = vmatpush3.msk.msra.mxu1 %vm26_vm0, %v184_v2  ;;  %199 = vmatprep.mubr.msk.f32.mxu1 %vm207_vm2, %v206_v0  ;;  %v15_v4 = vld [vmem:[%s249_s2] sm:$0xff] }
   0x4   :  { %195 = vmatmul.mubr.msk.f32.vlgmr.msra.gmra.mrb[0].mxu0 %vm22_vm1, %v14_v3  ;;  %200 = vmatmul.mubr.msk.f32.vlgmr.msra.gmra.mrb[0].mxu1 %vm22_vm1, %v14_v3 }
   0x5   :  { %205 = vset.pattern.permute.xlu0 %v208_v5 }
   0x6   :  { %19 = vperm.xlu0 %205, %v15_v4  }
  0x85   :  { %v20_v6 = vpop.permute.xlu0 %19 }
  0xd7   :  { %v96_v7 = vpop.f32.mrb[0].mxu0  ;;  %v172_v8 = vpop.f32.mrb[0].mxu1 }
  0xd8   :  { %v97_v9 = vadd.f32 %v96_v7, %v20_v6  ;;  %v173_v10 = vadd.f32 %v172_v8, %v20_v6  ;;  %v196_v11 = vpop.f32.mrb[1].mxu0  ;;  %v201_v12 = vpop.f32.mrb[1].mxu1 }
  0xda   :  { %100 = vst [vmem:[%s250_s3] sm:$0xff] %v97_v9  ;;  %187 = vst [vmem:[%s250_s3 + $0x8] sm:$0xff] %v173_v10 }

// kernel: single_conv_block.2
= control target key start
LH: loop header
LB: loop body
LE: loop exit
PB: predicated region body
PF: predicated region fallthrough
CT: control target
= control target key end

     0   :  { %vm20_vm0 = vcmask 1043456   ;;  %vm16_vm1 = vcmask 27648   ;;  %v207_v0 = vmov 0.0   ;;  %vm208_vm2 = vmmov 0   ;;  %s265_s0 = inlined_call_operand.vmem [shape: f32[2,4,128], index: 0, kind: input, shape index: {}]   ;;  %s266_s2 = inlined_call_operand.vmem [shape: f32[1,4,4], index: 2, kind: output, shape index: {1}]   ;;  %s267_s1 = inlined_call_operand.vmem [shape: f32[1,4,1], index: 1, kind: output, shape index: {0}]  }
   0x1   :  { %195 = vmatprep.subr.mxu0 %v207_v0  ;;  %v18_v1 = vld [vmem:[%s265_s0] sm:$0xf]  ;;  %197 = vmatprep.mubr.msk.f32.mxu0 %vm208_vm2, %v207_v0  ;;  %v190_v2 = vld [vmem:[%s265_s0 + $0x4] sm:$0xf]  ;;  %17 = vst.msk [vmem:[%s266_s2] sm:$0xf] %vm16_vm1, %v207_v0 }
   0x2   :  { %196 = vmatpush3.xpose.msra.mxu0 %v18_v1  ;;  %200 = vmatprep.subr.mxu1 %v207_v0  ;;  %v21_v3 = vsel %vm20_vm0, %v18_v1, 0.0  ;;  %v104_v4 = vsel %vm20_vm0, %v190_v2, 0.0  ;;  %vm14_vm3 = vcmask 3072  }
   0x3   :  { %201 = vmatpush3.xpose.msra.mxu1 %v190_v2  ;;  %202 = vmatprep.mubr.msk.f32.mxu1 %vm208_vm2, %v207_v0  ;;  %15 = vst.msk [vmem:[%s267_s1] sm:$0xf] %vm14_vm3, %v207_v0 }
   0x4   :  { %22 = vadd.xlane.f32.xlu0 %v21_v3 }
   0x5   :  { %198 = vmatmul.mubr.f32.vlgmr.msra.gmra.mrb[0].mxu0 %v18_v1 }
   0x6   :  { %203 = vmatmul.mubr.f32.vlgmr.msra.gmra.mrb[0].mxu1 %v190_v2 }
   0x8   :  { %105 = vadd.xlane.f32.xlu0 %v104_v4  ;;  %v27_v11 = vld [vmem:[%s266_s2] sm:$0xf] }
   0xa   :  { %v19_v5 = vld [vmem:[%s267_s1] sm:$0xf] }
  0x91   :  { %v23_v6 = vpop.xlane.xlu0 %22 }
  0x92   :  { %v24_v7 = vadd.f32 %v23_v6, %v19_v5 }
  0x94   :  { %26 = vst.msk [vmem:[%s267_s1] sm:$0xf] %vm14_vm3, %v24_v7 }
  0x95   :  { %v106_v8 = vpop.xlane.xlu0 %105 }
  0x9b   :  { %v103_v9 = vld [vmem:[%s267_s1] sm:$0xf] }
  0x9c   :  { %v107_v10 = vadd.f32 %v106_v8, %v103_v9 }
  0x9e   :  { %108 = vst.msk [vmem:[%s267_s1] sm:$0xf] %vm14_vm3, %v107_v10 }
  0xd8   :  { %v94_v12 = vpop.f32.mrb[0].mxu0 }
  0xd9   :  { %v98_v13 = vadd.f32 %v94_v12, %v27_v11  ;;  %v199_v14 = vpop.f32.mrb[1].mxu0  ;;  %v176_v15 = vpop.f32.mrb[0].mxu1 }
  0xda   :  { %v204_v16 = vpop.f32.mrb[1].mxu1 }
  0xdb   :  { %100 = vst.msk [vmem:[%s266_s2] sm:$0xf] %vm16_vm1, %v98_v13 }
  0xe2   :  { %v109_v17 = vld [vmem:[%s266_s2] sm:$0xf] }
  0xe3   :  { %v180_v18 = vadd.f32 %v176_v15, %v109_v17 }
  0xe5   :  { %181 = vst.msk [vmem:[%s266_s2] sm:$0xf] %vm16_vm1, %v180_v18 }

</bundles_post_ra>
